<compile_context>
chip_gen: v7x
topology: tpu7x:2x2x1
jax: 0.10.0
libtpu: 0.0.40
codegen_flags: <defaults>
</compile_context>

<pallas_src>
import math

import jax
import jax.numpy as jnp
from jax.experimental import pallas as pl
from jax.experimental.pallas import tpu as pltpu


def _round_up(x: int, m: int) -> int:
    return ((x + m - 1) // m) * m


# -----------------------------------------------------------------------------
# Kernels
# -----------------------------------------------------------------------------
def _head_kernel_full_k(x_ref, w_ref, b_ref, o_ref):
    # x: (tm, F), w: (F, tn) pre-transposed, b: (1, tn) f32, o: (tm, tn)
    acc = jnp.dot(x_ref[...], w_ref[...], preferred_element_type=jnp.float32)
    o_ref[...] = (acc + b_ref[...]).astype(o_ref.dtype)


def _head_kernel_ktiled(x_ref, w_ref, b_ref, o_ref, acc_ref):
    # blocks: x (tm, tk), w (tk, tn), b (1, tn) f32, o (tm, tn), acc (tm, tn) f32
    k = pl.program_id(2)

    @pl.when(k == 0)
    def _():
        acc_ref[...] = jnp.zeros_like(acc_ref)

    acc_ref[...] += jnp.dot(x_ref[...], w_ref[...],
                            preferred_element_type=jnp.float32)

    @pl.when(k == pl.num_programs(2) - 1)
    def _():
        o_ref[...] = (acc_ref[...] + b_ref[...]).astype(o_ref.dtype)


# -----------------------------------------------------------------------------
# Wrapper
# -----------------------------------------------------------------------------
def multilabel_logits(feats, weight, bias, *,
                      compute_dtype=jnp.bfloat16,
                      out_dtype=jnp.float32,
                      small_vmem_budget_bytes=16 * 1024 * 1024,
                      tile_vmem_budget_bytes=24 * 1024 * 1024):
    """logits = feats @ weight.T + bias.

    feats : (B, F)   pooled image features (output of the LEModel backbone)
    weight: (C, F)   classifier weight in native nn.Linear layout
    bias  : (C,)
    compute_dtype: operand dtype fed to the MXU (f32 accumulation always).
    out_dtype    : logits dtype (f32 by default, matching nn.Linear).
    """
    B, F = feats.shape
    C, F_w = weight.shape
    assert F_w == F and bias.shape == (C,)

    in_size = jnp.dtype(compute_dtype).itemsize
    b_size = jnp.dtype(jnp.float32).itemsize
    out_size = jnp.dtype(out_dtype).itemsize

    C_pad = _round_up(C, 128)           # lane-dense output / RHS columns

    # TODO(synk): in production, cast/transpose/pad the classifier weight once at
    # parameter setup time (it is a static parameter) instead of per forward.
    x = feats.astype(compute_dtype)
    w_t = weight.astype(compute_dtype).T            # (F, C): plain (M,K)x(K,N) matmul
    b_f32 = bias.astype(jnp.float32)
    if C_pad != C:
        w_t = jnp.pad(w_t, ((0, 0), (0, C_pad - C)))
        b_f32 = jnp.pad(b_f32, (0, C_pad - C))
    b2d = b_f32.reshape(1, C_pad)

    # ---- small path: single shot, no grid, everything resident in VMEM ------
    small_bytes = (in_size * (B * F + F * C_pad) + b_size * C_pad
                   + out_size * B * C_pad)
    if small_bytes <= small_vmem_budget_bytes:
        out = pl.pallas_call(
            _head_kernel_full_k,
            out_shape=jax.ShapeDtypeStruct((B, C_pad), out_dtype),
            in_specs=[pl.BlockSpec(memory_space=pltpu.MemorySpace.VMEM)] * 3,
            out_specs=pl.BlockSpec(memory_space=pltpu.MemorySpace.VMEM),
            compiler_params=pltpu.CompilerParams(
                vmem_limit_bytes=max(32 * 1024 * 1024, int(1.5 * small_bytes))),
            cost_estimate=pl.CostEstimate(
                flops=2 * B * F * C_pad, transcendentals=0,
                bytes_accessed=small_bytes),
        )(x, w_t, b2d)
        return out[:, :C] if C_pad != C else out

    # ---- VMEM footprint of one pipelined step (double-buffered) --------------
    def tile_bytes(tm, tn, tk, with_acc=False):
        bts = (2 * in_size * (tm * tk + tk * tn) + 2 * b_size * tn
               + 2 * out_size * tm * tn)
        if with_acc:
            bts += 4 * tm * tn
        return bts

    # ---- full-K path: 2-D grid, one dot per block, no reduction axis --------
    if tile_bytes(8, 128, F) <= tile_vmem_budget_bytes:
        tn = math.gcd(C_pad, 512)                     # 128 / 256 / 512, divides C_pad
        while tn > 128 and tile_bytes(8, tn, F) > tile_vmem_budget_bytes:
            tn //= 2

        # Batch tile: full batch if it fits (weight streamed from HBM exactly once),
        # otherwise the largest chunk that fits the VMEM budget.
        if tile_bytes(B, tn, F) <= tile_vmem_budget_bytes:
            tm, B_pad = B, B                          # block == full dim: no pad
        else:
            tm = 8
            for cand in (1024, 512, 256, 128, 64, 32, 16, 8):
                if cand <= B and tile_bytes(cand, tn, F) <= tile_vmem_budget_bytes:
                    tm = cand
                    break
            B_pad = _round_up(B, tm)

        grid_b, grid_c = B_pad // tm, C_pad // tn
        # v7x has 2 TensorCores: keep at least 2 blocks on a parallel axis if we can.
        if grid_b == 1 and grid_c == 1:
            if C_pad % 256 == 0:
                tn = C_pad // 2
                grid_c = 2
            elif B >= 16:
                tm = _round_up((B + 1) // 2, 8)
                B_pad = _round_up(B, tm)
                grid_b = B_pad // tm

        x_p = x if B_pad == B else jnp.pad(x, ((0, B_pad - B), (0, 0)))

        # Grid order: re-stream whichever operand costs fewer extra HBM bytes.
        if (grid_b - 1) * C_pad <= (grid_c - 1) * B_pad:
            grid = (grid_b, grid_c)                   # batch outer, class inner
            x_map = lambda i, j: (i, 0)
            w_map = lambda i, j: (0, j)
            b_map = lambda i, j: (0, j)
            o_map = lambda i, j: (i, j)
        else:
            grid = (grid_c, grid_b)                   # class outer, batch inner
            x_map = lambda j, i: (i, 0)
            w_map = lambda j, i: (0, j)
            b_map = lambda j, i: (0, j)
            o_map = lambda j, i: (i, j)

        need = tile_bytes(tm, tn, F)
        out = pl.pallas_call(
            _head_kernel_full_k,
            out_shape=jax.ShapeDtypeStruct((B_pad, C_pad), out_dtype),
            grid_spec=pltpu.PrefetchScalarGridSpec(
                num_scalar_prefetch=0,
                grid=grid,
                in_specs=[
                    pl.BlockSpec((tm, F), x_map),     # feats block (full K)
                    pl.BlockSpec((F, tn), w_map),     # weight block, pre-transposed
                    pl.BlockSpec((1, tn), b_map),     # bias block (f32)
                ],
                out_specs=pl.BlockSpec((tm, tn), o_map)),
            compiler_params=pltpu.CompilerParams(
                dimension_semantics=("parallel", "parallel"),
                vmem_limit_bytes=min(48 * 1024 * 1024,
                                     max(32 * 1024 * 1024, int(1.25 * need)))),
            cost_estimate=pl.CostEstimate(
                flops=2 * B_pad * F * C_pad, transcendentals=0,
                bytes_accessed=(in_size * (B_pad * F + F * C_pad)
                                + b_size * C_pad + out_size * B_pad * C_pad)),
        )(x_p, w_t, b2d)
        return out[:B, :C]

    # ---- fallback: feature dim too large for a full-K block — tile K --------
    tn = math.gcd(C_pad, 256)
    tk = 256
    B8 = _round_up(B, 8)
    tm = 8
    for cand in (256, 128, 64, 32, 16, 8):
        if cand <= B8 and tile_bytes(cand, tn, tk, with_acc=True) <= tile_vmem_budget_bytes:
            tm = cand
            break
    B_pad = _round_up(B, tm)
    F_pad = _round_up(F, tk)

    x_p = x if (B_pad, F_pad) == (B, F) else jnp.pad(
        x, ((0, B_pad - B), (0, F_pad - F)))
    w_p = w_t if F_pad == F else jnp.pad(w_t, ((0, F_pad - F), (0, 0)))

    grid = (B_pad // tm, C_pad // tn, F_pad // tk)
    need = tile_bytes(tm, tn, tk, with_acc=True)
    out = pl.pallas_call(
        _head_kernel_ktiled,
        out_shape=jax.ShapeDtypeStruct((B_pad, C_pad), out_dtype),
        grid_spec=pltpu.PrefetchScalarGridSpec(
            num_scalar_prefetch=0,
            grid=grid,
            in_specs=[
                pl.BlockSpec((tm, tk), lambda i, j, k: (i, k)),
                pl.BlockSpec((tk, tn), lambda i, j, k: (k, j)),
                pl.BlockSpec((1, tn), lambda i, j, k: (0, j)),
            ],
            out_specs=pl.BlockSpec((tm, tn), lambda i, j, k: (i, j)),
            scratch_shapes=[pltpu.VMEM((tm, tn), jnp.float32)]),
        compiler_params=pltpu.CompilerParams(
            dimension_semantics=("parallel", "parallel", "arbitrary"),
            vmem_limit_bytes=min(48 * 1024 * 1024,
                                 max(32 * 1024 * 1024, int(1.25 * need)))),
        cost_estimate=pl.CostEstimate(
            flops=2 * B_pad * F_pad * C_pad, transcendentals=0,
            bytes_accessed=(in_size * (B_pad * F_pad + F_pad * C_pad)
                            + b_size * C_pad + out_size * B_pad * C_pad)),
    )(x_p, w_p, b2d)
    return out[:B, :C]


if __name__ == "__main__":
    key = jax.random.PRNGKey(0)
    kx, kw, kb, kx2, kw2, kb2 = jax.random.split(key, 6)

    # Small shapes consistent with the module's head: pooled feats (z_dim) -> logits.
    batch, feat_dim, num_classes = 8, 32, 20
    bound = 1.0 / (feat_dim ** 0.5)
    weight = jax.random.uniform(kw, (num_classes, feat_dim), dtype=jnp.float32,
                                minval=-bound, maxval=bound)
    bias = jax.random.uniform(kb, (num_classes,), dtype=jnp.float32,
                              minval=-bound, maxval=bound)
    feats = jax.random.normal(kx, (batch, feat_dim), dtype=jnp.float32)
    ref = feats @ weight.T + bias

    # 1) small single-shot path, exact f32 compute
    out = jax.block_until_ready(
        multilabel_logits(feats, weight, bias, compute_dtype=jnp.float32))
    assert out.shape == (batch, num_classes)
    assert jnp.allclose(out, ref, atol=1e-5, rtol=1e-5)

    # 2) small single-shot path, default bf16 operands / f32 accumulation
    out_bf = jax.block_until_ready(multilabel_logits(feats, weight, bias))
    assert jnp.allclose(out_bf, ref, atol=3e-2, rtol=3e-2)

    # Bigger shapes: exercise the tiled full-K (2-D grid) path.
    B2, F2, C2 = 256, 512, 384
    bound2 = 1.0 / (F2 ** 0.5)
    w2 = jax.random.uniform(kw2, (C2, F2), dtype=jnp.float32,
                            minval=-bound2, maxval=bound2)
    b2 = jax.random.uniform(kb2, (C2,), dtype=jnp.float32,
                            minval=-bound2, maxval=bound2)
    x2 = jax.random.normal(kx2, (B2, F2), dtype=jnp.float32)
    ref2 = x2 @ w2.T + b2

    out2 = jax.block_until_ready(
        multilabel_logits(x2, w2, b2, compute_dtype=jnp.float32,
                          small_vmem_budget_bytes=0))      # force tiled path
    assert out2.shape == (B2, C2)
    assert jnp.allclose(out2, ref2, atol=1e-4, rtol=1e-4)

    out2_bf = jax.block_until_ready(
        multilabel_logits(x2, w2, b2, small_vmem_budget_bytes=0))
    assert jnp.allclose(out2_bf, ref2, atol=5e-2, rtol=5e-2)

    # 3) force the K-tiled fallback (tiny tile budget) to keep it exercised.
    out3 = jax.block_until_ready(
        multilabel_logits(x2, w2, b2, compute_dtype=jnp.float32,
                          small_vmem_budget_bytes=0,
                          tile_vmem_budget_bytes=512 * 1024))
    assert jnp.allclose(out3, ref2, atol=1e-4, rtol=1e-4)

    print("KERNEL_OK")
</pallas_src>

<mosaic_0001>
module attributes {stable_mosaic.version = 11 : i64} {
  func.func @_head_kernel_full_k(%arg0: memref<8x32xf32, #tpu.memory_space<vmem>>, %arg1: memref<32x128xf32, #tpu.memory_space<vmem>>, %arg2: memref<1x128xf32, #tpu.memory_space<vmem>>, %arg3: memref<8x128xf32, #tpu.memory_space<vmem>>) attributes {dimension_semantics = [], scalar_prefetch = 0 : i64, scratch_operands = 0 : i64, tpu.core_type = #tpu.core_type<tc>} {
    %c0 = arith.constant 0 : index
    %c0_0 = arith.constant 0 : index
    %0 = vector.load %arg0[%c0, %c0_0] : memref<8x32xf32, #tpu.memory_space<vmem>>, vector<8x32xf32>
    %c0_1 = arith.constant 0 : index
    %c0_2 = arith.constant 0 : index
    %1 = vector.load %arg1[%c0_1, %c0_2] : memref<32x128xf32, #tpu.memory_space<vmem>>, vector<32x128xf32>
    %cst = arith.constant dense<0.000000e+00> : vector<8x128xf32>
    %2 = tpu.matmul %0, %1, %cst {dimension_numbers = #tpu.dot_dimension_numbers<[1], [0], [0], [1], [0, 0, 1, 1], [], []>} : vector<8x32xf32>, vector<32x128xf32>, vector<8x128xf32> -> vector<8x128xf32>
    %c0_3 = arith.constant 0 : index
    %c0_4 = arith.constant 0 : index
    %3 = vector.load %arg2[%c0_3, %c0_4] : memref<1x128xf32, #tpu.memory_space<vmem>>, vector<1x128xf32>
    %4 = vector.broadcast %3 : vector<1x128xf32> to vector<8x128xf32>
    %5 = arith.addf %2, %4 : vector<8x128xf32>
    %c0_5 = arith.constant 0 : index
    %c0_6 = arith.constant 0 : index
    %6 = vector.load %arg3[%c0_5, %c0_6] : memref<8x128xf32, #tpu.memory_space<vmem>>, vector<8x128xf32>
    tpu.vector_store %arg3[%c0_5, %c0_6], %5 {strides = array<i32>} : memref<8x128xf32, #tpu.memory_space<vmem>>, vector<8x128xf32>,
    return
  }
}

</mosaic_0001>

<bundles_post_ra>
// kernel: tpu_custom_call.1
= control target key start
LH: loop header
LB: loop body
LE: loop exit
PB: predicated region body
PF: predicated region fallthrough
CT: control target
= control target key end

     0   :  { %8 = vsyncpa [#allocation3], 0  ;;  %s322_s0 = inlined_call_operand.hbm [shape: f32[8,32], index: 0, kind: input, shape index: {}]   ;;  %s323_s1 = inlined_call_operand.hbm [shape: f32[32,128], index: 1, kind: input, shape index: {}]   ;;  %s324_s2 = inlined_call_operand.vmem [shape: f32[1,128], index: 2, kind: input, shape index: {}]   ;;  %s325_s3 = inlined_call_operand.hbm [shape: f32[8,128], index: 3, kind: output, shape index: {}]  }
   0x1   :  { %9 = vsyncpa [#allocation6], 0 }
   0x2   :  { %10 = vsyncpa [#allocation4], 0  ;;  %s248_s12 = smov [#allocation2]   ;;  %s249_s14 = smov [#allocation5]  }
   0x3   :  { %s17_s13 = sshll.u32 %s248_s12, 4  ;;  %s26_s15 = sshll.u32 %s249_s14, 4  ;;  %s18_s13 = int_to_ptr.vmem [resolvable:$true] %s17_s13  ;;  %s276_s15 = int_to_ptr.vmem [resolvable:$true] %s26_s15 }
   0x4   :  { %s176_s18 = scalar_lea.hbm %s322_s0, 128 }
   0x5   :  { %p177_p0 = scmp.ne.s32.totalorder %s322_s0, %s176_s18  ;;  %p180_p1 = scmp.lt.u32.totalorder %s176_s18, %s322_s0 }
   0x7   :  { %p182_p2 = pnand %p180_p1, %p177_p0 }
   0x9   :  { %185 = shalt.err (!%p182_p2)
}
   0xa   :  { %s186_s23 = scalar_lea.vmem %s18_s13, 128  ;;  %p191_p4 = scmp.lt.s32.totalorder %s18_s13, %s18_s13 }
   0xb   :  { %p187_p3 = scmp.ne.s32.totalorder %s18_s13, %s186_s23  ;;  %p192_p5 = scmp.lt.s32.totalorder %s186_s23, %s186_s23 }
   0xd   :  { %p193_p6 = por %p192_p5, %p191_p4 }
   0xf   :  { %p194_p7 = pnand %p193_p6, %p187_p3 }
  0x11   :  { %197 = shalt.err (!%p194_p7)
}
  0x12   :  { %20 = dma.hbm_to_vmem [thread:$0]  %s322_s0, 128, %s18_s13, [#allocation3]  }
  0x13   :  { %s198_s28 = scalar_lea.hbm %s323_s1, 512 }
  0x14   :  { %p199_p8 = scmp.ne.s32.totalorder %s323_s1, %s198_s28  ;;  %p202_p9 = scmp.lt.u32.totalorder %s198_s28, %s323_s1 }
  0x16   :  { %p204_p10 = pnand %p202_p9, %p199_p8 }
  0x18   :  { %207 = shalt.err (!%p204_p10)
}
  0x19   :  { %s208_s6 = scalar_lea.vmem %s276_s15, 512  ;;  %p213_p12 = scmp.lt.s32.totalorder %s276_s15, %s276_s15 }
  0x1a   :  { %p209_p11 = scmp.ne.s32.totalorder %s276_s15, %s208_s6  ;;  %p214_p13 = scmp.lt.s32.totalorder %s208_s6, %s208_s6 }
  0x1c   :  { %p215_p0 = por %p214_p13, %p213_p12 }
  0x1e   :  { %p216_p1 = pnand %p215_p0, %p209_p11 }
  0x20   :  { %219 = shalt.err (!%p216_p1)
}
  0x21   :  { %s250_s0 = smov 128   ;;  %s251_s7 = smov 8  }
  0x22   :  { %32 = dma.hbm_to_vmem [thread:$0]  %s323_s1, 512, %s276_s15, [#allocation6], %s250_s0, %s250_s0, %s251_s7  }
  0x23   :  { %242 = dma.done.wait [#allocation3], 128  }
  0x24   :  { %243 = vsyncadd [#allocation3], 4294967168 }
  0x25   :  { %244 = dma.done.wait [#allocation6], 512  }
  0x26   :  { %245 = vsyncadd [#allocation6], 4294966784  ;;  %v252_v0 = vmov 0.0|0.0   ;;  %vm253_vm0 = vmmov 0   ;;  %v254_v1 = vmov 0.0   ;;  %v42_v2 = vld [vmem:[#allocation5] sm:$0xff] }
  0x27   :  { %162 = vmatprep.subr.bf16.mxu0 %v252_v0  ;;  %159 = vmatprep.mubr.msk.f32.mxu0 %vm253_vm0, %v254_v1  ;;  %v43_v3 = vld [vmem:[#allocation5 + $0x8] sm:$0xff]  ;;  %v44_v4 = vld [vmem:[#allocation5 + $0x10] sm:$0xff]  ;;  %v45_v6 = vld [vmem:[#allocation5 + $0x18] sm:$0xff]  ;;  %vm53_vm1 = vcmask 261120   ;;  %s255_s11 = smov [#allocation7]  }
  0x28   :  { %v163_v5 = vpack.c.bf16 %v43_v3, %v42_v2  ;;  %v166_v7 = vpack.c.bf16 %v45_v6, %v44_v4  ;;  %v41_v8 = vld [vmem:[#allocation2] sm:$0xff]  ;;  %s134_s12 = sshll.u32 %s255_s11, 4  ;;  %s135_s12 = int_to_ptr.vmem [resolvable:$true] %s134_s12 }
  0x29   :  { %v144_v9 = vld [vmem:[%s324_s2] ss:$0 sm:$0xff]  ;;  %s220_s13 = scalar_lea.vmem %s135_s12, 128  ;;  %p225_p3 = scmp.lt.s32.totalorder %s135_s12, %s135_s12 }
  0x2a   :  { %164 = vmatpush3.bf16.msra.mxu0 %v163_v5  ;;  %p221_p2 = scmp.ne.s32.totalorder %s135_s12, %s220_s13  ;;  %p226_p4 = scmp.lt.s32.totalorder %s220_s13, %s220_s13 }
  0x2b   :  { %165 = vmatprep.subr.bf16.mxu0 %v252_v0 }
  0x2c   :  { %p227_p5 = por %p226_p4, %p225_p3 }
  0x2e   :  { %167 = vmatpush3.bf16.msra.mxu0 %v166_v7  ;;  %p228_p6 = pnand %p227_p5, %p221_p2 }
  0x31   :  { %160 = vmatmul.mubr.msk.f32.vlgmr.msra.gmra.mrb[0].mxu0 %vm53_vm1, %v41_v8 }
 0x104   :  { %v123_v10 = vpop.f32.mrb[0].mxu0 }
 0x105   :  { %v124_v11 = vadd.f32 %v144_v9, %v123_v10  ;;  %v161_v12 = vpop.f32.mrb[1].mxu0 }
 0x107   :  { %127 = vst [vmem:[#allocation7] sm:$0xff] %v124_v11 }
 0x108   :  { %231 = shalt.err (!%p228_p6)
}
 0x109   :  { %s232_s16 = scalar_lea.hbm %s325_s3, 128 }
 0x10a   :  { %p233_p7 = scmp.ne.s32.totalorder %s325_s3, %s232_s16  ;;  %p236_p8 = scmp.lt.u32.totalorder %s232_s16, %s325_s3 }
 0x10c   :  { %p238_p9 = pnand %p236_p8, %p233_p7 }
 0x10e   :  { %241 = shalt.err (!%p238_p9)
}
 0x10f   :  { %137 = dma.vmem_to_hbm [thread:$0]  %s135_s12, 128, %s325_s3, [#allocation4]  }
 0x110   :  { %246 = dma.done.wait [#allocation4], 128  }
 0x111   :  { %247 = vsyncadd [#allocation4], 4294967168 }
 0x112   :  { %141 = vsyncpa [#allocation3], 1 }
 0x113   :  { %142 = vsyncpa [#allocation6], 1 }
 0x114   :  { %143 = vsyncpa [#allocation4], 1 }

</bundles_post_ra>
